<compile_context>
chip_gen: v6e
topology: v6e:2x2x1
jax: 0.10.0
libtpu: 0.0.40
codegen_flags: <defaults>
</compile_context>

<pallas_src>
import functools

import jax
import jax.numpy as jnp
from jax.experimental import pallas as pl
from jax.experimental.pallas import tpu as pltpu

K = 3  # conv kernel size (kernel_size=3, stride=1, padding=1)


def _resblock_kernel(x_ref, w1_ref, b1_ref, w2_ref, b2_ref, out_ref, pad_ref,
                     *scratch, seg_len, fuse):
    """One lane-dense slab (C, T) covering T//seg_len batch elements.

    x_ref   : (C, T)            input slab (compute dtype), T = B_blk * L
    w1_ref  : (C, 3C) | (K,C,C) conv1 weight, BN1 scale folded
    b1_ref  : (C, 1)            folded BN1 bias (f32)
    w2_ref  : (C, 3C) | (K,C,C) conv2 weight, BN2 scale folded
    b2_ref  : (C, 1)            folded BN2 bias (f32)
    out_ref : (C, T)            output slab
    pad_ref : (C, T + 2)        VMEM scratch: globally padded x / h
    scratch : ((3C, T),)        VMEM scratch for the stacked operand (fuse only)
    """
    C, T = out_ref.shape
    x = x_ref[...]
    cd = x.dtype

    # Zero the two global halo columns.  Re-zeroed every step (two masked
    # 1-lane stores) instead of only on step 0 so a megacore grid split
    # (each core starts at a nonzero program_id with its own scratch) stays
    # correct.  The interior is fully rewritten every conv phase.
    zero_col = jnp.zeros((C, 1), cd)
    pad_ref[:, 0:1] = zero_col
    pad_ref[:, T + 1:T + 2] = zero_col

    # Per-batch-segment boundary masks: lane j holds position j % seg_len of
    # its segment; neighbours must not leak across segment boundaries.
    pos = jax.lax.broadcasted_iota(jnp.int32, (1, T), 1) % seg_len
    not_first = pos != 0
    not_last = pos != (seg_len - 1)
    zeros = jnp.zeros((C, T), cd)

    stk_ref = scratch[0] if fuse else None

    def conv(w_ref, v):
        """'same'-padded K=3 conv over every segment, f32 accumulation."""
        pad_ref[:, 1:T + 1] = v
        # Offset reads straight from the ref (no full-scratch value + shift).
        left = jnp.where(not_first, pad_ref[:, 0:T], zeros)       # v[:, j-1]
        right = jnp.where(not_last, pad_ref[:, 2:T + 2], zeros)   # v[:, j+1]
        if fuse:
            # One MXU matmul: (C, 3C) @ (3C, T), taps stacked along sublanes.
            stk_ref[0:C, :] = left
            stk_ref[C:2 * C, :] = v
            stk_ref[2 * C:3 * C, :] = right
            return jnp.dot(w_ref[...], stk_ref[...],
                           preferred_element_type=jnp.float32)
        # Fallback (C % 8 != 0): three accumulating per-tap matmuls.
        acc = jnp.dot(w_ref[0], left, preferred_element_type=jnp.float32)
        acc = acc + jnp.dot(w_ref[1], v, preferred_element_type=jnp.float32)
        acc = acc + jnp.dot(w_ref[2], right, preferred_element_type=jnp.float32)
        return acc

    # conv1 + BN1 (scale folded into w1, bias here) + ReLU        (f32 math)
    h = jnp.maximum(conv(w1_ref, x) + b1_ref[...], 0.0)

    # conv2 + BN2 + residual add + ReLU
    o = conv(w2_ref, h.astype(cd)) + b2_ref[...] + x.astype(jnp.float32)
    out_ref[...] = jnp.maximum(o, 0.0).astype(out_ref.dtype)


def residual_block(x, w1, gamma1, beta1, mean1, var1,
                   w2, gamma2, beta2, mean2, var2, *,
                   eps=1e-5, compute_dtype=jnp.bfloat16, out_dtype=None,
                   max_block_lanes=None):
    """x: (N, C, L).  Conv weights are (Cout, Cin, K) like PyTorch.  Eval-mode BN.

    compute_dtype: MXU operand dtype (bf16 default: ~3x MXU throughput and half
    the x/out HBM traffic on v5e/v6e/v7x).  Accumulation / BN / ReLU stay f32.
    out_dtype defaults to x.dtype.  max_block_lanes optionally caps the lane
    slab per grid step (testing / VMEM tuning).
    """
    N, C, L = x.shape
    c_out, c_in, k = w1.shape
    if not (c_out == c_in == C and k == K):
        # TODO(synk): downsample=True branch (1x1 strided conv + BN on the
        # identity) not implemented; only the default Cin==Cout, stride=1 path.
        raise NotImplementedError("only downsample=False / Cin==Cout supported")
    if out_dtype is None:
        out_dtype = x.dtype

    f32 = jnp.float32
    inv1 = gamma1.astype(f32) * jax.lax.rsqrt(var1.astype(f32) + eps)
    inv2 = gamma2.astype(f32) * jax.lax.rsqrt(var2.astype(f32) + eps)

    # Fold BN scale into conv weights (per out-channel) in f32, then cast to
    # the MXU compute dtype; biases stay f32 and are applied in-kernel.
    w1s = w1.astype(f32) * inv1[:, None, None]
    w2s = w2.astype(f32) * inv2[:, None, None]
    b1 = (beta1.astype(f32) - mean1.astype(f32) * inv1).reshape(C, 1)
    b2 = (beta2.astype(f32) - mean2.astype(f32) * inv2).reshape(C, 1)

    fuse = (C % 8 == 0)
    if fuse:
        # (Cout, Cin, K) -> (Cout, K*Cin): single fused-tap matmul per conv.
        w1k = jnp.transpose(w1s, (0, 2, 1)).reshape(C, K * C).astype(compute_dtype)
        w2k = jnp.transpose(w2s, (0, 2, 1)).reshape(C, K * C).astype(compute_dtype)
        w_block, w_map = (C, K * C), (lambda i: (0, 0))
    else:
        # (Cout, Cin, K) -> (K, Cout, Cin): per-tap lane-dense tiles.
        w1k = jnp.transpose(w1s, (2, 0, 1)).astype(compute_dtype)
        w2k = jnp.transpose(w2s, (2, 0, 1)).astype(compute_dtype)
        w_block, w_map = (K, C, C), (lambda i: (0, 0, 0))

    # Layout plumbing: fold batch into the lane axis so each grid step sees a
    # lane-dense output slab (biggest measured single lever for small C/L).
    xt = jnp.transpose(x, (1, 0, 2)).reshape(C, N * L).astype(compute_dtype)

    itemsize = jnp.dtype(compute_dtype).itemsize
    out_itemsize = jnp.dtype(out_dtype).itemsize
    # Rough per-lane VMEM bytes per step: double-buffered x tile, padded
    # scratch, double-buffered out tile, stacked-operand scratch (fused path),
    # plus ~3 f32-sized temporaries (acc / h / masked operands).
    per_lane = C * (3 * itemsize + 2 * out_itemsize
                    + (3 * itemsize if fuse else 0) + 3 * 4)
    max_lanes = max(L, (16 * 1024 * 1024) // per_lane)   # ~16 MiB data budget
    if max_block_lanes is not None:
        max_lanes = min(max_lanes, max(L, max_block_lanes))

    # Largest batch block whose lane width is a multiple of 128 and fits the
    # budget; fall back to the whole batch (block == full array is always legal).
    candidates = [d for d in range(1, N + 1)
                  if N % d == 0 and (d * L) % 128 == 0 and d * L <= max_lanes]
    b_blk = candidates[-1] if candidates else N
    # TODO(synk): for very long L (one batch element exceeding the budget), add
    # an L-axis grid with 1-column halo-overlapped input blocks.
    T = b_blk * L
    grid = (N // b_blk,)

    cost = pl.CostEstimate(
        flops=4 * K * C * C * N * L,                       # two convs, 2 flop/MAC
        transcendentals=0,
        bytes_accessed=int(N * C * L * (itemsize + out_itemsize)   # x in, out
                           + 2 * K * C * C * itemsize              # weights
                           + 2 * C * 4))                           # biases (f32)

    scratch_shapes = [pltpu.VMEM((C, T + 2), compute_dtype)]
    if fuse:
        scratch_shapes.append(pltpu.VMEM((K * C, T), compute_dtype))

    # TODO(synk): single-buffer the grid-invariant weight/bias specs
    # (pipeline_mode=pl.Buffered(1)) once that VMEM saving is load-bearing at
    # large C; they are only DMA'd once either way (constant index_map).
    grid_spec = pltpu.PrefetchScalarGridSpec(
        num_scalar_prefetch=0,
        grid=grid,
        in_specs=[
            pl.BlockSpec((C, T), lambda i: (0, i)),       # x: lane-dense slab
            pl.BlockSpec(w_block, w_map),                 # w1 (grid-invariant)
            pl.BlockSpec((C, 1), lambda i: (0, 0)),       # b1
            pl.BlockSpec(w_block, w_map),                 # w2
            pl.BlockSpec((C, 1), lambda i: (0, 0)),       # b2
        ],
        out_specs=pl.BlockSpec((C, T), lambda i: (0, i)),
        scratch_shapes=scratch_shapes,
    )

    kernel = functools.partial(_resblock_kernel, seg_len=L, fuse=fuse)
    out2d = pl.pallas_call(
        kernel,
        out_shape=jax.ShapeDtypeStruct((C, N * L), out_dtype),
        grid_spec=grid_spec,
        compiler_params=pltpu.CompilerParams(
            # lane/batch axis is embarrassingly parallel -> v7x megacore splits it
            dimension_semantics=("parallel",),
            # explicit scoped-VMEM budget: tiles are sized to ~16 MiB, so 48 MiB
            # leaves headroom on v7x (64 MiB) and is well under v5e/v6e (128 MiB)
            vmem_limit_bytes=48 * 1024 * 1024,
        ),
        cost_estimate=cost,
    )(xt, w1k, b1, w2k, b2)

    return jnp.transpose(out2d.reshape(C, N, L), (1, 0, 2))


def _reference(x, w1, gamma1, beta1, mean1, var1,
               w2, gamma2, beta2, mean2, var2, eps=1e-5):
    """Pure-JAX reference mirroring the PyTorch forward (eval-mode BN)."""
    def conv1d(inp, w):
        return jax.lax.conv_general_dilated(
            inp, w, window_strides=(1,), padding=((1, 1),),
            dimension_numbers=('NCH', 'OIH', 'NCH'))

    def bn(inp, g, b, m, v):
        return (inp - m[None, :, None]) / jnp.sqrt(v[None, :, None] + eps) \
            * g[None, :, None] + b[None, :, None]

    out = jax.nn.relu(bn(conv1d(x, w1), gamma1, beta1, mean1, var1))
    out = bn(conv1d(out, w2), gamma2, beta2, mean2, var2)
    return jax.nn.relu(out + x)


if __name__ == "__main__":
    def make_args(key, N, C, L):
        keys = jax.random.split(key, 11)
        x = jax.random.normal(keys[0], (N, C, L), dtype=jnp.float32)
        w1 = jax.random.normal(keys[1], (C, C, K), dtype=jnp.float32) * 0.1
        w2 = jax.random.normal(keys[2], (C, C, K), dtype=jnp.float32) * 0.1
        gamma1 = jax.random.uniform(keys[3], (C,), minval=0.5, maxval=1.5)
        beta1 = jax.random.normal(keys[4], (C,)) * 0.1
        mean1 = jax.random.normal(keys[5], (C,)) * 0.1
        var1 = jax.random.uniform(keys[6], (C,), minval=0.5, maxval=1.5)
        gamma2 = jax.random.uniform(keys[7], (C,), minval=0.5, maxval=1.5)
        beta2 = jax.random.normal(keys[8], (C,)) * 0.1
        mean2 = jax.random.normal(keys[9], (C,)) * 0.1
        var2 = jax.random.uniform(keys[10], (C,), minval=0.5, maxval=1.5)
        return (x, w1, gamma1, beta1, mean1, var1,
                w2, gamma2, beta2, mean2, var2)

    k1, k2, k3 = jax.random.split(jax.random.PRNGKey(0), 3)
    checks = [
        # (name, args, extra wrapper kwargs)
        ("C=4 per-tap path, single block", make_args(k1, 4, 4, 16), {}),
        ("C=8 fused-tap path, 128-lane block", make_args(k2, 4, 8, 32), {}),
        ("C=8 fused-tap path, 2-step grid", make_args(k3, 16, 8, 16),
         {"max_block_lanes": 128}),
    ]

    for name, args, kw in checks:
        ref = _reference(*args)

        # f32 MXU-operand path: tight check vs the pure-JAX reference.
        out_f32 = residual_block(*args, compute_dtype=jnp.float32, **kw)
        jax.block_until_ready(out_f32)
        assert out_f32.shape == ref.shape, f"shape mismatch: {name}"
        assert jnp.allclose(out_f32, ref, atol=1e-3, rtol=1e-3), \
            f"f32 mismatch vs reference: {name}"

        # bf16 MXU-operand path (perf default); loose tolerance for bf16 rounding.
        out_bf16 = residual_block(*args, compute_dtype=jnp.bfloat16, **kw)
        jax.block_until_ready(out_bf16)
        assert out_bf16.shape == ref.shape, f"shape mismatch (bf16): {name}"
        assert jnp.allclose(out_bf16.astype(jnp.float32), ref,
                            atol=1e-1, rtol=1e-1), \
            f"bf16 mismatch vs reference: {name}"

    print("KERNEL_OK")
</pallas_src>

<mosaic_0001>
module attributes {stable_mosaic.version = 11 : i64} {
  func.func @_resblock_kernel(%arg0: i32, %arg1: memref<4x64xf32, #tpu.memory_space<vmem>>, %arg2: memref<3x4x4xf32, #tpu.memory_space<vmem>>, %arg3: memref<4x1xf32, #tpu.memory_space<vmem>>, %arg4: memref<3x4x4xf32, #tpu.memory_space<vmem>>, %arg5: memref<4x1xf32, #tpu.memory_space<vmem>>, %arg6: memref<4x64xf32, #tpu.memory_space<vmem>>, %arg7: memref<4x66xf32, #tpu.memory_space<vmem>>) attributes {dimension_semantics = [#tpu.dimension_semantics<parallel>], iteration_bounds = array<i64: 1>, scalar_prefetch = 0 : i64, scratch_operands = 1 : i64, tpu.core_type = #tpu.core_type<tc>, window_params = [{transform_indices = @transform_0, window_bounds = array<i64: 4, 64>}, {pipeline_mode = #tpu.pipeline_mode<synchronous>, transform_indices = @transform_1, window_bounds = array<i64: 3, 4, 4>}, {pipeline_mode = #tpu.pipeline_mode<synchronous>, transform_indices = @transform_2, window_bounds = array<i64: 4, 1>}, {pipeline_mode = #tpu.pipeline_mode<synchronous>, transform_indices = @transform_3, window_bounds = array<i64: 3, 4, 4>}, {pipeline_mode = #tpu.pipeline_mode<synchronous>, transform_indices = @transform_4, window_bounds = array<i64: 4, 1>}, {transform_indices = @transform_5, window_bounds = array<i64: 4, 64>}]} {
    %c0 = arith.constant 0 : index
    %c0_0 = arith.constant 0 : index
    %0 = vector.load %arg1[%c0, %c0_0] : memref<4x64xf32, #tpu.memory_space<vmem>>, vector<4x64xf32>
    %cst = arith.constant 0.000000e+00 : f32
    %1 = vector.broadcast %cst : f32 to vector<4x1xf32>
    %c0_1 = arith.constant 0 : index
    %c0_2 = arith.constant 0 : index
    %2 = vector.load %arg7[%c0_1, %c0_2] : memref<4x66xf32, #tpu.memory_space<vmem>>, vector<4x1xf32>
    tpu.vector_store %arg7[%c0_1, %c0_2], %1 {strides = array<i32>} : memref<4x66xf32, #tpu.memory_space<vmem>>, vector<4x1xf32>,
    %c0_3 = arith.constant 0 : index
    %c65 = arith.constant 65 : index
    %3 = vector.load %arg7[%c0_3, %c65] : memref<4x66xf32, #tpu.memory_space<vmem>>, vector<4x1xf32>
    tpu.vector_store %arg7[%c0_3, %c65], %1 {strides = array<i32>} : memref<4x66xf32, #tpu.memory_space<vmem>>, vector<4x1xf32>,
    %4 = tpu.iota {dimensions = array<i32: 1>} : vector<1x64xi32>
    %c16_i32 = arith.constant 16 : i32
    %c0_i32 = arith.constant 0 : i32
    %5 = arith.cmpi eq, %c16_i32, %c0_i32 : i32
    %c1_i32 = arith.constant 1 : i32
    %6 = arith.select %5, %c1_i32, %c16_i32 : i32
    %7 = vector.broadcast %6 : i32 to vector<1x64xi32>
    %8 = arith.remsi %4, %7 : vector<1x64xi32>
    %c0_i32_4 = arith.constant 0 : i32
    %9 = vector.broadcast %c0_i32_4 : i32 to vector<1x64xi32>
    %10 = arith.cmpi ne, %8, %9 : vector<1x64xi32>
    %c0_i32_5 = arith.constant 0 : i32
    %11 = vector.broadcast %c0_i32_5 : i32 to vector<1x64xi32>
    %12 = arith.cmpi slt, %8, %11 : vector<1x64xi32>
    %c0_i32_6 = arith.constant 0 : i32
    %13 = arith.cmpi slt, %6, %c0_i32_6 : i32
    %14 = vector.broadcast %13 : i1 to vector<1x64xi1>
    %15 = vector.broadcast %14 : vector<1x64xi1> to vector<1x64xi1>
    %16 = arith.xori %12, %15 : vector<1x64xi1>
    %17 = arith.andi %16, %10 : vector<1x64xi1>
    %18 = vector.broadcast %6 : i32 to vector<1x64xi32>
    %19 = arith.addi %8, %18 : vector<1x64xi32>
    %20 = arith.select %17, %19, %8 : vector<1x64xi1>, vector<1x64xi32>
    %c0_i32_7 = arith.constant 0 : i32
    %21 = vector.broadcast %c0_i32_7 : i32 to vector<1x64xi32>
    %22 = arith.cmpi ne, %20, %21 : vector<1x64xi32>
    %c15_i32 = arith.constant 15 : i32
    %23 = vector.broadcast %c15_i32 : i32 to vector<1x64xi32>
    %24 = arith.cmpi ne, %20, %23 : vector<1x64xi32>
    %cst_8 = arith.constant 0.000000e+00 : f32
    %25 = vector.broadcast %cst_8 : f32 to vector<4x64xf32>
    %c0_9 = arith.constant 0 : index
    %c1 = arith.constant 1 : index
    %26 = vector.load %arg7[%c0_9, %c1] : memref<4x66xf32, #tpu.memory_space<vmem>>, vector<4x64xf32>
    tpu.vector_store %arg7[%c0_9, %c1], %0 {strides = array<i32>} : memref<4x66xf32, #tpu.memory_space<vmem>>, vector<4x64xf32>,
    %c0_10 = arith.constant 0 : index
    %c0_11 = arith.constant 0 : index
    %27 = vector.load %arg7[%c0_10, %c0_11] : memref<4x66xf32, #tpu.memory_space<vmem>>, vector<4x64xf32>
    %28 = vector.shape_cast %22 : vector<1x64xi1> to vector<1x64xi1>
    %29 = vector.broadcast %28 : vector<1x64xi1> to vector<4x64xi1>
    %30 = arith.select %29, %27, %25 : vector<4x64xi1>, vector<4x64xf32>
    %c0_12 = arith.constant 0 : index
    %c2 = arith.constant 2 : index
    %31 = vector.load %arg7[%c0_12, %c2] : memref<4x66xf32, #tpu.memory_space<vmem>>, vector<4x64xf32>
    %32 = vector.shape_cast %24 : vector<1x64xi1> to vector<1x64xi1>
    %33 = vector.broadcast %32 : vector<1x64xi1> to vector<4x64xi1>
    %34 = arith.select %33, %31, %25 : vector<4x64xi1>, vector<4x64xf32>
    %c0_13 = arith.constant 0 : index
    %c0_14 = arith.constant 0 : index
    %c0_15 = arith.constant 0 : index
    %35 = vector.load %arg2[%c0_13, %c0_14, %c0_15] : memref<3x4x4xf32, #tpu.memory_space<vmem>>, vector<1x4x4xf32>
    %36 = vector.shape_cast %35 : vector<1x4x4xf32> to vector<4x4xf32>
    %cst_16 = arith.constant dense<0.000000e+00> : vector<4x64xf32>
    %37 = tpu.matmul %36, %30, %cst_16 {dimension_numbers = #tpu.dot_dimension_numbers<[1], [0], [0], [1], [0, 0, 1, 1], [], []>} : vector<4x4xf32>, vector<4x64xf32>, vector<4x64xf32> -> vector<4x64xf32>
    %c1_17 = arith.constant 1 : index
    %c0_18 = arith.constant 0 : index
    %c0_19 = arith.constant 0 : index
    %38 = vector.load %arg2[%c1_17, %c0_18, %c0_19] : memref<3x4x4xf32, #tpu.memory_space<vmem>>, vector<1x4x4xf32>
    %39 = vector.shape_cast %38 : vector<1x4x4xf32> to vector<4x4xf32>
    %cst_20 = arith.constant dense<0.000000e+00> : vector<4x64xf32>
    %40 = tpu.matmul %39, %0, %cst_20 {dimension_numbers = #tpu.dot_dimension_numbers<[1], [0], [0], [1], [0, 0, 1, 1], [], []>} : vector<4x4xf32>, vector<4x64xf32>, vector<4x64xf32> -> vector<4x64xf32>
    %41 = arith.addf %37, %40 : vector<4x64xf32>
    %c2_21 = arith.constant 2 : index
    %c0_22 = arith.constant 0 : index
    %c0_23 = arith.constant 0 : index
    %42 = vector.load %arg2[%c2_21, %c0_22, %c0_23] : memref<3x4x4xf32, #tpu.memory_space<vmem>>, vector<1x4x4xf32>
    %43 = vector.shape_cast %42 : vector<1x4x4xf32> to vector<4x4xf32>
    %cst_24 = arith.constant dense<0.000000e+00> : vector<4x64xf32>
    %44 = tpu.matmul %43, %34, %cst_24 {dimension_numbers = #tpu.dot_dimension_numbers<[1], [0], [0], [1], [0, 0, 1, 1], [], []>} : vector<4x4xf32>, vector<4x64xf32>, vector<4x64xf32> -> vector<4x64xf32>
    %45 = arith.addf %41, %44 : vector<4x64xf32>
    %c0_25 = arith.constant 0 : index
    %c0_26 = arith.constant 0 : index
    %46 = vector.load %arg3[%c0_25, %c0_26] : memref<4x1xf32, #tpu.memory_space<vmem>>, vector<4x1xf32>
    %47 = vector.broadcast %46 : vector<4x1xf32> to vector<4x64xf32>
    %48 = arith.addf %45, %47 : vector<4x64xf32>
    %cst_27 = arith.constant 0.000000e+00 : f32
    %49 = vector.broadcast %cst_27 : f32 to vector<4x64xf32>
    %50 = arith.maximumf %48, %49 : vector<4x64xf32>
    %c0_28 = arith.constant 0 : index
    %c1_29 = arith.constant 1 : index
    %51 = vector.load %arg7[%c0_28, %c1_29] : memref<4x66xf32, #tpu.memory_space<vmem>>, vector<4x64xf32>
    tpu.vector_store %arg7[%c0_28, %c1_29], %50 {strides = array<i32>} : memref<4x66xf32, #tpu.memory_space<vmem>>, vector<4x64xf32>,
    %c0_30 = arith.constant 0 : index
    %c0_31 = arith.constant 0 : index
    %52 = vector.load %arg7[%c0_30, %c0_31] : memref<4x66xf32, #tpu.memory_space<vmem>>, vector<4x64xf32>
    %53 = vector.shape_cast %22 : vector<1x64xi1> to vector<1x64xi1>
    %54 = vector.broadcast %53 : vector<1x64xi1> to vector<4x64xi1>
    %55 = arith.select %54, %52, %25 : vector<4x64xi1>, vector<4x64xf32>
    %c0_32 = arith.constant 0 : index
    %c2_33 = arith.constant 2 : index
    %56 = vector.load %arg7[%c0_32, %c2_33] : memref<4x66xf32, #tpu.memory_space<vmem>>, vector<4x64xf32>
    %57 = vector.shape_cast %24 : vector<1x64xi1> to vector<1x64xi1>
    %58 = vector.broadcast %57 : vector<1x64xi1> to vector<4x64xi1>
    %59 = arith.select %58, %56, %25 : vector<4x64xi1>, vector<4x64xf32>
    %c0_34 = arith.constant 0 : index
    %c0_35 = arith.constant 0 : index
    %c0_36 = arith.constant 0 : index
    %60 = vector.load %arg4[%c0_34, %c0_35, %c0_36] : memref<3x4x4xf32, #tpu.memory_space<vmem>>, vector<1x4x4xf32>
    %61 = vector.shape_cast %60 : vector<1x4x4xf32> to vector<4x4xf32>
    %cst_37 = arith.constant dense<0.000000e+00> : vector<4x64xf32>
    %62 = tpu.matmul %61, %55, %cst_37 {dimension_numbers = #tpu.dot_dimension_numbers<[1], [0], [0], [1], [0, 0, 1, 1], [], []>} : vector<4x4xf32>, vector<4x64xf32>, vector<4x64xf32> -> vector<4x64xf32>
    %c1_38 = arith.constant 1 : index
    %c0_39 = arith.constant 0 : index
    %c0_40 = arith.constant 0 : index
    %63 = vector.load %arg4[%c1_38, %c0_39, %c0_40] : memref<3x4x4xf32, #tpu.memory_space<vmem>>, vector<1x4x4xf32>
    %64 = vector.shape_cast %63 : vector<1x4x4xf32> to vector<4x4xf32>
    %cst_41 = arith.constant dense<0.000000e+00> : vector<4x64xf32>
    %65 = tpu.matmul %64, %50, %cst_41 {dimension_numbers = #tpu.dot_dimension_numbers<[1], [0], [0], [1], [0, 0, 1, 1], [], []>} : vector<4x4xf32>, vector<4x64xf32>, vector<4x64xf32> -> vector<4x64xf32>
    %66 = arith.addf %62, %65 : vector<4x64xf32>
    %c2_42 = arith.constant 2 : index
    %c0_43 = arith.constant 0 : index
    %c0_44 = arith.constant 0 : index
    %67 = vector.load %arg4[%c2_42, %c0_43, %c0_44] : memref<3x4x4xf32, #tpu.memory_space<vmem>>, vector<1x4x4xf32>
    %68 = vector.shape_cast %67 : vector<1x4x4xf32> to vector<4x4xf32>
    %cst_45 = arith.constant dense<0.000000e+00> : vector<4x64xf32>
    %69 = tpu.matmul %68, %59, %cst_45 {dimension_numbers = #tpu.dot_dimension_numbers<[1], [0], [0], [1], [0, 0, 1, 1], [], []>} : vector<4x4xf32>, vector<4x64xf32>, vector<4x64xf32> -> vector<4x64xf32>
    %70 = arith.addf %66, %69 : vector<4x64xf32>
    %c0_46 = arith.constant 0 : index
    %c0_47 = arith.constant 0 : index
    %71 = vector.load %arg5[%c0_46, %c0_47] : memref<4x1xf32, #tpu.memory_space<vmem>>, vector<4x1xf32>
    %72 = vector.broadcast %71 : vector<4x1xf32> to vector<4x64xf32>
    %73 = arith.addf %70, %72 : vector<4x64xf32>
    %74 = arith.addf %73, %0 : vector<4x64xf32>
    %cst_48 = arith.constant 0.000000e+00 : f32
    %75 = vector.broadcast %cst_48 : f32 to vector<4x64xf32>
    %76 = arith.maximumf %74, %75 : vector<4x64xf32>
    %c0_49 = arith.constant 0 : index
    %c0_50 = arith.constant 0 : index
    %77 = vector.load %arg6[%c0_49, %c0_50] : memref<4x64xf32, #tpu.memory_space<vmem>>, vector<4x64xf32>
    tpu.vector_store %arg6[%c0_49, %c0_50], %76 {strides = array<i32>} : memref<4x64xf32, #tpu.memory_space<vmem>>, vector<4x64xf32>,
    return
  }
  func.func @transform_0(%arg0: i32) -> (i32, i32) {
    %c0_i32 = arith.constant 0 : i32
    %c0_i32_0 = arith.constant 0 : i32
    return %c0_i32, %arg0 : i32, i32
  }
  func.func @transform_1(%arg0: i32) -> (i32, i32, i32) {
    %c0_i32 = arith.constant 0 : i32
    %c0_i32_0 = arith.constant 0 : i32
    %c0_i32_1 = arith.constant 0 : i32
    %c0_i32_2 = arith.constant 0 : i32
    return %c0_i32, %c0_i32_0, %c0_i32_1 : i32, i32, i32
  }
  func.func @transform_2(%arg0: i32) -> (i32, i32) {
    %c0_i32 = arith.constant 0 : i32
    %c0_i32_0 = arith.constant 0 : i32
    %c0_i32_1 = arith.constant 0 : i32
    return %c0_i32, %c0_i32_0 : i32, i32
  }
  func.func @transform_3(%arg0: i32) -> (i32, i32, i32) {
    %c0_i32 = arith.constant 0 : i32
    %c0_i32_0 = arith.constant 0 : i32
    %c0_i32_1 = arith.constant 0 : i32
    %c0_i32_2 = arith.constant 0 : i32
    return %c0_i32, %c0_i32_0, %c0_i32_1 : i32, i32, i32
  }
  func.func @transform_4(%arg0: i32) -> (i32, i32) {
    %c0_i32 = arith.constant 0 : i32
    %c0_i32_0 = arith.constant 0 : i32
    %c0_i32_1 = arith.constant 0 : i32
    return %c0_i32, %c0_i32_0 : i32, i32
  }
  func.func @transform_5(%arg0: i32) -> (i32, i32) {
    %c0_i32 = arith.constant 0 : i32
    %c0_i32_0 = arith.constant 0 : i32
    return %c0_i32, %arg0 : i32, i32
  }
}

</mosaic_0001>

<bundles_post_ra>
// kernel: tpu_custom_call.1
= control target key start
LH: loop header
LB: loop body
LE: loop exit
PB: predicated region body
PF: predicated region fallthrough
CT: control target
= control target key end

     0   :  { %10 = vsyncpa [#allocation4], 0  ;;  %s857_s0 = inlined_call_operand.hbm [shape: f32[4,64], index: 0, kind: input, shape index: {}]   ;;  %s858_s1 = inlined_call_operand.hbm [shape: f32[3,4,4], index: 1, kind: input, shape index: {}]   ;;  %s859_s2 = inlined_call_operand.vmem [shape: f32[4,1], index: 2, kind: input, shape index: {}]   ;;  %s860_s3 = inlined_call_operand.vmem [shape: f32[3,4,4], index: 3, kind: input, shape index: {}]   ;;  %s861_s4 = inlined_call_operand.vmem [shape: f32[4,1], index: 4, kind: input, shape index: {}]   ;;  %s862_s5 = inlined_call_operand.hbm [shape: f32[4,64], index: 5, kind: output, shape index: {}]  }
   0x1   :  { %11 = vsyncpa [#allocation7], 0 }
   0x2   :  { %12 = vsyncpa [#allocation5], 0  ;;  %s734_s18 = smov [#allocation3]   ;;  %s735_s20 = smov [#allocation6]  }
   0x3   :  { %s19_s19 = sshll.u32 %s734_s18, 4  ;;  %s28_s21 = sshll.u32 %s735_s20, 4  ;;  %s20_s19 = int_to_ptr.vmem [resolvable:$true] %s19_s19  ;;  %s29_s21 = int_to_ptr.vmem [resolvable:$true] %s28_s21 }
   0x4   :  { %s676_s22 = scalar_lea.vmem %s20_s19, 64  ;;  %p681_p1 = scmp.lt.s32.totalorder %s20_s19, %s20_s19 }
   0x5   :  { %p677_p0 = scmp.ne.s32.totalorder %s20_s19, %s676_s22  ;;  %p682_p2 = scmp.lt.s32.totalorder %s676_s22, %s676_s22 }
   0x7   :  { %p683_p3 = por %p682_p2, %p681_p1 }
   0x9   :  { %p684_p4 = pnand %p683_p3, %p677_p0 }
   0xb   :  { %687 = shalt.err (!%p684_p4)
}
   0xc   :  { %22 = dma.hbm_to_vmem [thread:$0]  %s857_s0, 64, %s20_s19, [#allocation4]  }
   0xd   :  { %s696_s25 = scalar_lea.vmem %s29_s21, 192  ;;  %p701_p6 = scmp.lt.s32.totalorder %s29_s21, %s29_s21 }
   0xe   :  { %p697_p5 = scmp.ne.s32.totalorder %s29_s21, %s696_s25  ;;  %p702_p7 = scmp.lt.s32.totalorder %s696_s25, %s696_s25 }
  0x10   :  { %p703_p8 = por %p702_p7, %p701_p6 }
  0x12   :  { %p704_p9 = pnand %p703_p8, %p697_p5 }
  0x14   :  { %707 = shalt.err (!%p704_p9)
}
  0x15   :  { %s736_s26 = smov 64   ;;  %s737_s27 = smov 4  }
  0x16   :  { %34 = dma.hbm_to_vmem [thread:$0]  %s858_s1, 192, %s29_s21, [#allocation7], %s736_s26, %s736_s26, %s737_s27  }
  0x17   :  { %728 = dma.done.wait [#allocation4], 64  }
  0x18   :  { %729 = vsyncadd [#allocation4], 4294967232 }
  0x19   :  { %730 = dma.done.wait [#allocation7], 192  }
  0x1a   :  { %731 = vsyncadd [#allocation7], 4294967104  ;;  %vm48_vm0 = vcmask 3072   ;;  %vm50_vm1 = vcmask 536072   ;;  %v738_v0 = vmov 0.0   ;;  %vm739_vm2 = vmmov 0  }
  0x1b   :  { %49 = vst.msk [vmem:[#allocation2] sm:$0xf] %vm48_vm0, %v738_v0  ;;  %631 = vmatprep.subr.mxu1 %v738_v0  ;;  %626 = vmatprep.subr.mxu0 %v738_v0  ;;  %vm88_vm3 = vcmask 31744   ;;  %v788_v1 = vld [vmem:[#allocation3] sm:$0xf]  ;;  %vm92_vm4 = vcmask 1043456   ;;  %v52_v3 = vlaneseq }
  0x1c   :  { %51 = vst.msk [vmem:[#allocation2] sm:$0xf] %vm50_vm1, %v738_v0  ;;  %628 = vmatprep.mubr.msk.f32.mxu0 %vm739_vm2, %v738_v0  ;;  %633 = vmatprep.mubr.msk.f32.mxu1 %vm739_vm2, %v738_v0  ;;  %v87_v2 = vld [vmem:[#allocation6 + $0x4] sm:$0xf]  ;;  %s740_s0 = smov 1   ;;  %vm72_vm5 = vcmask 527368  }
  0x1d   :  { %69 = vrot.lane.b32.xlu0 %v788_v1, %s740_s0  ;;  %627 = vmatpush3.msk.msra.mxu0 %vm92_vm4, %v788_v1  ;;  %v53_v4 = vand.u32 127, %v52_v3  ;;  %v320_v5 = vld [vmem:[%s859_s2] sm:$0xf]  ;;  %v741_v6 = vmov 0   ;;  %v85_v11 = vld [vmem:[#allocation6] sm:$0xf] }
  0x1e   :  { %629 = vmatmul.mubr.msk.f32.vlgmr.msra.gmra.mxu0 %vm88_vm3, %v87_v2  ;;  %636 = vmatprep.subr.mxu0 %v738_v0  ;;  %s742_s6 = smov 126   ;;  %v242_v17 = vld [vmem:[#allocation6 + $0x8] sm:$0xf]  ;;  %v606_v28 = vld [vmem:[%s860_s3 + $0x4] sm:$0xf]  ;;  %s743_s13 = smov [#allocation8]  }
  0x1f   :  { %638 = vmatprep.mubr.msk.f32.mxu0 %vm739_vm2, %v738_v0  ;;  %666 = vset.pattern.permute.xlu1 %v741_v6  ;;  %v58_v8 = vand.u32 15, %v53_v4  ;;  %v573_v29 = vld [vmem:[%s861_s4] sm:$0xf]  ;;  %v611_v37 = vld [vmem:[%s860_s3 + $0x8] sm:$0xf]  ;;  %s590_s14 = sshll.u32 %s743_s13, 4  ;;  %s591_s14 = int_to_ptr.vmem [resolvable:$true] %s590_s14 }
  0x20   :  { %667 = vset.pattern.permute.xlu0 %v741_v6  ;;  %323 = vperm.xlu1 %666, %v320_v5   ;;  %v340_v32 = vld [vmem:[%s860_s3] sm:$0xf]  ;;  %vm582_vm8 = vcmask 519168   ;;  %s708_s3 = scalar_lea.vmem %s591_s14, 64  ;;  %p713_p11 = scmp.lt.s32.totalorder %s591_s14, %s591_s14 }
  0x21   :  { %vm802_vm6 = vcmp.ne.s32.totalorder %v58_v8, 0  ;;  %vm814_vm7 = vcmp.ne.s32.totalorder %v58_v8, 15  ;;  %p709_p10 = scmp.ne.s32.totalorder %s591_s14, %s708_s3  ;;  %p714_p12 = scmp.lt.s32.totalorder %s708_s3, %s708_s3 }
  0x23   :  { %p715_p13 = por %p714_p12, %p713_p11 }
  0x25   :  { %p716_p0 = pnand %p715_p13, %p709_p10 }
  0x8f   :  { %v70_v7 = vpop.permute.xlu0 %69 }
  0x90   :  { %73 = vst.msk [vmem:[#allocation2] sm:$0xf] %vm72_vm5, %v70_v7 }
  0x97   :  { %v74_v10 = vld [vmem:[#allocation2] sm:$0xf] }
  0x98   :  { %81 = vrot.lane.b32.xlu0 %v74_v10, %s742_s6  ;;  %v77_v12 = vsel %vm802_vm6, %v74_v10, 0.0 }
  0x99   :  { %632 = vmatpush3.msk.msra.mxu1 %vm92_vm4, %v77_v12 }
  0x9a   :  { %634 = vmatmul.mubr.msk.f32.vlgmr.msra.gmra.mxu1 %vm88_vm3, %v85_v11  ;;  %641 = vmatprep.subr.mxu1 %v738_v0 }
  0x9b   :  { %643 = vmatprep.mubr.msk.f32.mxu1 %vm739_vm2, %v738_v0  ;;  %v324_v23 = vpop.permute.xlu1 %323 }
  0xde   :  { %v161_v13 = vpop.f32.mrf.mxu0 }
  0xe0   :  { %v630_v14 = vpop.f32.mrf.mxu0 }
 0x10a   :  { %v82_v16 = vpop.permute.xlu0 %81 }
 0x10b   :  { %v84_v18 = vsel %vm814_vm7, %v82_v16, 0.0 }
 0x10c   :  { %637 = vmatpush3.msk.msra.mxu0 %vm92_vm4, %v84_v18 }
 0x10d   :  { %639 = vmatmul.mubr.msk.f32.vlgmr.msra.gmra.mxu0 %vm88_vm3, %v242_v17  ;;  %646 = vmatprep.subr.mxu0 %v738_v0 }
 0x10e   :  { %648 = vmatprep.mubr.msk.f32.mxu0 %vm739_vm2, %v738_v0 }
 0x15a   :  { %v237_v19 = vpop.f32.mrf.mxu1 }
 0x15b   :  { %v238_v21 = vadd.f32 %v237_v19, %v161_v13 }
 0x15c   :  { %v635_v20 = vpop.f32.mrf.mxu1 }
 0x1cd   :  { %v315_v22 = vpop.f32.mrf.mxu0 }
 0x1ce   :  { %v319_v24 = vadd.f32 %v315_v22, %v238_v21 }
 0x1cf   :  { %v640_v25 = vpop.f32.mrf.mxu0 }
 0x1d0   :  { %v326_v26 = vadd.f32 %v324_v23, %v319_v24 }
 0x1d2   :  { %v327_v27 = vmax.f32 %v326_v26, 0.0 }
 0x1d4   :  { %329 = vrot.lane.b32.xlu1 %v327_v27, %s740_s0  ;;  %642 = vmatpush3.msk.msra.mxu1 %vm92_vm4, %v327_v27 }
 0x1d5   :  { %644 = vmatmul.mubr.msk.f32.vlgmr.msra.gmra.mxu1 %vm88_vm3, %v606_v28  ;;  %651 = vmatprep.subr.mxu1 %v738_v0 }
 0x1d6   :  { %653 = vmatprep.mubr.msk.f32.mxu1 %vm739_vm2, %v738_v0 }
 0x1d8   :  { %576 = vperm.xlu1 %666, %v573_v29  }
 0x246   :  { %v330_v30 = vpop.permute.xlu1 %329 }
 0x247   :  { %332 = vst.msk [vmem:[#allocation2] sm:$0xf] %vm72_vm5, %v330_v30 }
 0x24e   :  { %v333_v31 = vld [vmem:[#allocation2] sm:$0xf] }
 0x24f   :  { %336 = vrot.lane.b32.xlu0 %v333_v31, %s742_s6  ;;  %v334_v33 = vsel %vm802_vm6, %v333_v31, 0.0 }
 0x250   :  { %647 = vmatpush3.msk.msra.mxu0 %vm92_vm4, %v334_v33 }
 0x251   :  { %649 = vmatmul.mubr.msk.f32.vlgmr.msra.gmra.mxu0 %vm88_vm3, %v340_v32 }
 0x253   :  { %v577_v44 = vpop.permute.xlu1 %576 }
 0x295   :  { %v414_v34 = vpop.f32.mrf.mxu1 }
 0x297   :  { %v645_v35 = vpop.f32.mrf.mxu1 }
 0x2c1   :  { %v337_v36 = vpop.permute.xlu0 %336 }
 0x2c2   :  { %v339_v38 = vsel %vm814_vm7, %v337_v36, 0.0 }
 0x2c3   :  { %652 = vmatpush3.msk.msra.mxu1 %vm92_vm4, %v339_v38 }
 0x2c4   :  { %654 = vmatmul.mubr.msk.f32.vlgmr.msra.gmra.mxu1 %vm88_vm3, %v611_v37 }
 0x311   :  { %v490_v39 = vpop.f32.mrf.mxu0 }
 0x312   :  { %v491_v41 = vadd.f32 %v490_v39, %v414_v34 }
 0x313   :  { %v650_v40 = vpop.f32.mrf.mxu0 }
 0x384   :  { %v568_v42 = vpop.f32.mrf.mxu1 }
 0x385   :  { %v572_v43 = vadd.f32 %v568_v42, %v491_v41 }
 0x386   :  { %v655_v45 = vpop.f32.mrf.mxu1 }
 0x387   :  { %v579_v46 = vadd.f32 %v577_v44, %v572_v43 }
 0x389   :  { %v580_v47 = vadd.f32 %v579_v46, %v788_v1 }
 0x38b   :  { %v581_v48 = vmax.f32 %v580_v47, 0.0 }
 0x38d   :  { %583 = vst.msk [vmem:[#allocation8] sm:$0xf] %vm582_vm8, %v581_v48 }
 0x38e   :  { %719 = shalt.err (!%p716_p0)
}
 0x38f   :  { %593 = dma.vmem_to_hbm [thread:$0]  %s591_s14, 64, %s862_s5, [#allocation5]  }
 0x390   :  { %732 = dma.done.wait [#allocation5], 64  }
 0x391   :  { %733 = vsyncadd [#allocation5], 4294967232 }
 0x392   :  { %597 = vsyncpa [#allocation4], 1 }
 0x393   :  { %598 = vsyncpa [#allocation7], 1 }
 0x394   :  { %599 = vsyncpa [#allocation5], 1 }

</bundles_post_ra>
